<compile_context>
chip_gen: v5e
topology: v5e:2x2
jax: 0.10.0
libtpu: 0.0.40
codegen_flags: <defaults>
</compile_context>

<pallas_src>
import functools

import jax
import jax.numpy as jnp
from jax import lax
from jax.experimental import pallas as pl
from jax.experimental.pallas import tpu as pltpu


def _mlp_kernel(x_ref, w1_ref, b1_ref, w2_ref, b2_ref, w3_ref, b3_ref, ot_ref):
    """Fused 3-layer MLP on one [block_n, in_c] natural-layout batch tile.

    Computes y^T = W3 @ relu(W2 @ relu(W1 @ x^T + b1) + b2) + b3 without ever
    materializing x^T: the first matmul contracts the minor (in_c) axes of W1
    and the x tile directly.
    """
    x = x_ref[...]                                                # (bn, in_c) bf16

    # (hid, in) . (bn, in) contracted on in -> (hid, bn), f32 accumulate.
    h1 = lax.dot_general(w1_ref[...], x,
                         dimension_numbers=(((1,), (1,)), ((), ())),
                         preferred_element_type=jnp.float32)
    h1 = jnp.maximum(h1 + b1_ref[...], 0.0).astype(jnp.bfloat16)  # relu on f32 acc

    h2 = jnp.dot(w2_ref[...], h1, preferred_element_type=jnp.float32)
    h2 = jnp.maximum(h2 + b2_ref[...], 0.0).astype(jnp.bfloat16)

    out = jnp.dot(w3_ref[...], h2, preferred_element_type=jnp.float32)
    ot_ref[...] = (out + b3_ref[...]).astype(ot_ref.dtype)        # f32, lane-dense store


def _round_up(v, m):
    return ((v + m - 1) // m) * m


def _pick_block_n(n, block_n):
    """Lane-aligned batch tile; guarantees >=2 grid steps when n > 128 (v7x megacore)."""
    if n <= 128:
        return n                                   # single full-extent tile
    bn = min(block_n, _round_up(pl.cdiv(n, 2), 128))
    return max(128, bn)


@functools.partial(jax.jit, static_argnames=("block_n",))
def predictor_forward(x, w1, b1, w2, b2, w3, b3, *, block_n=2048):
    """Predictor.forward (inference-mode dropout == identity).

    x : [N, in_c]   bf16 activations (natural layout, streamed directly)
    w*: [out, in]   native PyTorch nn.Linear layout, bf16
    b*: [out, 1]    f32
    returns [N, out_c] bf16
    """
    n, in_c = x.shape
    hidden = w1.shape[0]
    out_c = w3.shape[0]

    bn = _pick_block_n(n, block_n)
    n_pad = _round_up(n, bn)
    xp = x if n_pad == n else jnp.pad(x, ((0, n_pad - n), (0, 0)))
    grid = (n_pad // bn,)

    flops = 2 * n_pad * (in_c * hidden + hidden * hidden + hidden * out_c)
    bytes_accessed = (
        n_pad * (in_c * x.dtype.itemsize + out_c * 4)             # stream x in, y^T out
        + (w1.size + w2.size + w3.size) * w1.dtype.itemsize
        + (b1.size + b2.size + b3.size) * 4
    )

    yt = pl.pallas_call(
        _mlp_kernel,
        out_shape=jax.ShapeDtypeStruct((out_c, n_pad), jnp.float32),
        grid=grid,
        in_specs=[
            pl.BlockSpec((bn, in_c), lambda i: (i, 0)),           # x tile, natural layout
            pl.BlockSpec((hidden, in_c), lambda i: (0, 0)),       # W1 (VMEM-resident)
            pl.BlockSpec((hidden, 1), lambda i: (0, 0)),          # b1
            pl.BlockSpec((hidden, hidden), lambda i: (0, 0)),     # W2
            pl.BlockSpec((hidden, 1), lambda i: (0, 0)),          # b2
            pl.BlockSpec((out_c, hidden), lambda i: (0, 0)),      # W3
            pl.BlockSpec((out_c, 1), lambda i: (0, 0)),           # b3
        ],
        out_specs=pl.BlockSpec((out_c, bn), lambda i: (0, i)),    # y^T column tile
        compiler_params=pltpu.CompilerParams(
            dimension_semantics=("parallel",),                    # megacore split on v7x
        ),
        cost_estimate=pl.CostEstimate(
            flops=flops, transcendentals=0, bytes_accessed=bytes_accessed),
    )(xp, w1, b1, w2, b2, w3, b3)

    # Single output-side layout fix-up: [out_c, N] f32 -> [N, out_c] bf16.
    return yt.T[:n].astype(x.dtype)


def _init_linear(key, fan_in, fan_out):
    """Deterministic init mimicking torch.nn.Linear defaults; native [out, in] layout."""
    kw, kb = jax.random.split(key)
    bound = 1.0 / jnp.sqrt(float(fan_in))
    w = jax.random.uniform(kw, (fan_out, fan_in), jnp.float32, -bound, bound)
    b = jax.random.uniform(kb, (fan_out, 1), jnp.float32, -bound, bound)
    return w.astype(jnp.bfloat16), b                              # bf16 weights, f32 bias


def _reference_forward(x, w1, b1, w2, b2, w3, b3):
    """Pure-JAX reference mirroring the kernel's per-layer bf16 downcasts."""
    f32 = jnp.float32
    h = x.astype(f32)
    h = jnp.maximum(h @ w1.astype(f32).T + b1[:, 0], 0.0).astype(jnp.bfloat16).astype(f32)
    h = jnp.maximum(h @ w2.astype(f32).T + b2[:, 0], 0.0).astype(jnp.bfloat16).astype(f32)
    out = h @ w3.astype(f32).T + b3[:, 0]
    return out.astype(jnp.bfloat16)


if __name__ == "__main__":
    in_channels, hidden_channels, out_channels = 16, 32, 8
    batch = 512          # lane-aligned; tile-cap logic gives a 2-step parallel grid

    key = jax.random.PRNGKey(0)
    kx, k1, k2, k3 = jax.random.split(key, 4)

    x = jax.random.normal(kx, (batch, in_channels), jnp.float32).astype(jnp.bfloat16)
    w1, b1 = _init_linear(k1, in_channels, hidden_channels)
    w2, b2 = _init_linear(k2, hidden_channels, hidden_channels)
    w3, b3 = _init_linear(k3, hidden_channels, out_channels)

    out = predictor_forward(x, w1, b1, w2, b2, w3, b3)
    out = jax.block_until_ready(out)

    ref = _reference_forward(x, w1, b1, w2, b2, w3, b3)
    assert out.shape == (batch, out_channels)
    assert jnp.allclose(out.astype(jnp.float32), ref.astype(jnp.float32),
                        atol=2e-2, rtol=2e-2), "mismatch vs JAX reference"

    print("KERNEL_OK")
</pallas_src>

<mosaic_0001>
module attributes {stable_mosaic.version = 11 : i64} {
  func.func @_mlp_kernel(%arg0: i32, %arg1: memref<256x16xbf16, #tpu.memory_space<vmem>>, %arg2: memref<32x16xbf16, #tpu.memory_space<vmem>>, %arg3: memref<32x1xf32, #tpu.memory_space<vmem>>, %arg4: memref<32x32xbf16, #tpu.memory_space<vmem>>, %arg5: memref<32x1xf32, #tpu.memory_space<vmem>>, %arg6: memref<8x32xbf16, #tpu.memory_space<vmem>>, %arg7: memref<8x1xf32, #tpu.memory_space<vmem>>, %arg8: memref<8x256xf32, #tpu.memory_space<vmem>>) attributes {dimension_semantics = [#tpu.dimension_semantics<parallel>], iteration_bounds = array<i64: 2>, scalar_prefetch = 0 : i64, scratch_operands = 0 : i64, tpu.core_type = #tpu.core_type<tc>, window_params = [{transform_indices = @transform_0, window_bounds = array<i64: 256, 16>}, {pipeline_mode = #tpu.pipeline_mode<synchronous>, transform_indices = @transform_1, window_bounds = array<i64: 32, 16>}, {pipeline_mode = #tpu.pipeline_mode<synchronous>, transform_indices = @transform_2, window_bounds = array<i64: 32, 1>}, {pipeline_mode = #tpu.pipeline_mode<synchronous>, transform_indices = @transform_3, window_bounds = array<i64: 32, 32>}, {pipeline_mode = #tpu.pipeline_mode<synchronous>, transform_indices = @transform_4, window_bounds = array<i64: 32, 1>}, {pipeline_mode = #tpu.pipeline_mode<synchronous>, transform_indices = @transform_5, window_bounds = array<i64: 8, 32>}, {pipeline_mode = #tpu.pipeline_mode<synchronous>, transform_indices = @transform_6, window_bounds = array<i64: 8, 1>}, {transform_indices = @transform_7, window_bounds = array<i64: 8, 256>}]} {
    %c0 = arith.constant 0 : index
    %c0_0 = arith.constant 0 : index
    %0 = vector.load %arg1[%c0, %c0_0] : memref<256x16xbf16, #tpu.memory_space<vmem>>, vector<256x16xbf16>
    %c0_1 = arith.constant 0 : index
    %c0_2 = arith.constant 0 : index
    %1 = vector.load %arg2[%c0_1, %c0_2] : memref<32x16xbf16, #tpu.memory_space<vmem>>, vector<32x16xbf16>
    %cst = arith.constant dense<0.000000e+00> : vector<32x256xf32>
    %2 = tpu.matmul %1, %0, %cst {dimension_numbers = #tpu.dot_dimension_numbers<[1], [1], [0], [0], [0, 0, 1, 0], [], []>} : vector<32x16xbf16>, vector<256x16xbf16>, vector<32x256xf32> -> vector<32x256xf32>
    %c0_3 = arith.constant 0 : index
    %c0_4 = arith.constant 0 : index
    %3 = vector.load %arg3[%c0_3, %c0_4] : memref<32x1xf32, #tpu.memory_space<vmem>>, vector<32x1xf32>
    %4 = vector.broadcast %3 : vector<32x1xf32> to vector<32x256xf32>
    %5 = arith.addf %2, %4 : vector<32x256xf32>
    %cst_5 = arith.constant 0.000000e+00 : f32
    %6 = vector.broadcast %cst_5 : f32 to vector<32x256xf32>
    %7 = arith.maximumf %5, %6 : vector<32x256xf32>
    %8 = arith.truncf %7 : vector<32x256xf32> to vector<32x256xbf16>
    %c0_6 = arith.constant 0 : index
    %c0_7 = arith.constant 0 : index
    %9 = vector.load %arg4[%c0_6, %c0_7] : memref<32x32xbf16, #tpu.memory_space<vmem>>, vector<32x32xbf16>
    %cst_8 = arith.constant dense<0.000000e+00> : vector<32x256xf32>
    %10 = tpu.matmul %9, %8, %cst_8 {dimension_numbers = #tpu.dot_dimension_numbers<[1], [0], [0], [1], [0, 0, 1, 1], [], []>} : vector<32x32xbf16>, vector<32x256xbf16>, vector<32x256xf32> -> vector<32x256xf32>
    %c0_9 = arith.constant 0 : index
    %c0_10 = arith.constant 0 : index
    %11 = vector.load %arg5[%c0_9, %c0_10] : memref<32x1xf32, #tpu.memory_space<vmem>>, vector<32x1xf32>
    %12 = vector.broadcast %11 : vector<32x1xf32> to vector<32x256xf32>
    %13 = arith.addf %10, %12 : vector<32x256xf32>
    %cst_11 = arith.constant 0.000000e+00 : f32
    %14 = vector.broadcast %cst_11 : f32 to vector<32x256xf32>
    %15 = arith.maximumf %13, %14 : vector<32x256xf32>
    %16 = arith.truncf %15 : vector<32x256xf32> to vector<32x256xbf16>
    %c0_12 = arith.constant 0 : index
    %c0_13 = arith.constant 0 : index
    %17 = vector.load %arg6[%c0_12, %c0_13] : memref<8x32xbf16, #tpu.memory_space<vmem>>, vector<8x32xbf16>
    %cst_14 = arith.constant dense<0.000000e+00> : vector<8x256xf32>
    %18 = tpu.matmul %17, %16, %cst_14 {dimension_numbers = #tpu.dot_dimension_numbers<[1], [0], [0], [1], [0, 0, 1, 1], [], []>} : vector<8x32xbf16>, vector<32x256xbf16>, vector<8x256xf32> -> vector<8x256xf32>
    %c0_15 = arith.constant 0 : index
    %c0_16 = arith.constant 0 : index
    %19 = vector.load %arg7[%c0_15, %c0_16] : memref<8x1xf32, #tpu.memory_space<vmem>>, vector<8x1xf32>
    %20 = vector.broadcast %19 : vector<8x1xf32> to vector<8x256xf32>
    %21 = arith.addf %18, %20 : vector<8x256xf32>
    %c0_17 = arith.constant 0 : index
    %c0_18 = arith.constant 0 : index
    %22 = vector.load %arg8[%c0_17, %c0_18] : memref<8x256xf32, #tpu.memory_space<vmem>>, vector<8x256xf32>
    tpu.vector_store %arg8[%c0_17, %c0_18], %21 {strides = array<i32>} : memref<8x256xf32, #tpu.memory_space<vmem>>, vector<8x256xf32>,
    return
  }
  func.func @transform_0(%arg0: i32) -> (i32, i32) {
    %c0_i32 = arith.constant 0 : i32
    %c0_i32_0 = arith.constant 0 : i32
    return %arg0, %c0_i32 : i32, i32
  }
  func.func @transform_1(%arg0: i32) -> (i32, i32) {
    %c0_i32 = arith.constant 0 : i32
    %c0_i32_0 = arith.constant 0 : i32
    %c0_i32_1 = arith.constant 0 : i32
    return %c0_i32, %c0_i32_0 : i32, i32
  }
  func.func @transform_2(%arg0: i32) -> (i32, i32) {
    %c0_i32 = arith.constant 0 : i32
    %c0_i32_0 = arith.constant 0 : i32
    %c0_i32_1 = arith.constant 0 : i32
    return %c0_i32, %c0_i32_0 : i32, i32
  }
  func.func @transform_3(%arg0: i32) -> (i32, i32) {
    %c0_i32 = arith.constant 0 : i32
    %c0_i32_0 = arith.constant 0 : i32
    %c0_i32_1 = arith.constant 0 : i32
    return %c0_i32, %c0_i32_0 : i32, i32
  }
  func.func @transform_4(%arg0: i32) -> (i32, i32) {
    %c0_i32 = arith.constant 0 : i32
    %c0_i32_0 = arith.constant 0 : i32
    %c0_i32_1 = arith.constant 0 : i32
    return %c0_i32, %c0_i32_0 : i32, i32
  }
  func.func @transform_5(%arg0: i32) -> (i32, i32) {
    %c0_i32 = arith.constant 0 : i32
    %c0_i32_0 = arith.constant 0 : i32
    %c0_i32_1 = arith.constant 0 : i32
    return %c0_i32, %c0_i32_0 : i32, i32
  }
  func.func @transform_6(%arg0: i32) -> (i32, i32) {
    %c0_i32 = arith.constant 0 : i32
    %c0_i32_0 = arith.constant 0 : i32
    %c0_i32_1 = arith.constant 0 : i32
    return %c0_i32, %c0_i32_0 : i32, i32
  }
  func.func @transform_7(%arg0: i32) -> (i32, i32) {
    %c0_i32 = arith.constant 0 : i32
    %c0_i32_0 = arith.constant 0 : i32
    return %c0_i32, %arg0 : i32, i32
  }
}

</mosaic_0001>

<bundles_post_ra>
// kernel: predictor_forward.1
= control target key start
LH: loop header
LB: loop body
LE: loop exit
PB: predicated region body
PF: predicated region fallthrough
CT: control target
= control target key end

     0   :  { %s909_s24 = smov 0   ;;  %s1016_s0 = inlined_call_operand.vmem [shape: bf16[512,16], index: 0, kind: input, shape index: {}]   ;;  %s1017_s1 = inlined_call_operand.vmem [shape: bf16[32,16], index: 1, kind: input, shape index: {}]   ;;  %s1018_s2 = inlined_call_operand.vmem [shape: f32[32,1], index: 2, kind: input, shape index: {}]   ;;  %s1019_s3 = inlined_call_operand.vmem [shape: bf16[32,32], index: 3, kind: input, shape index: {}]   ;;  %s1020_s4 = inlined_call_operand.vmem [shape: f32[32,1], index: 4, kind: input, shape index: {}]   ;;  %s1021_s5 = inlined_call_operand.vmem [shape: bf16[8,32], index: 5, kind: input, shape index: {}]   ;;  %s1022_s6 = inlined_call_operand.vmem [shape: f32[8,1], index: 6, kind: input, shape index: {}]   ;;  %s1023_s7 = inlined_call_operand.vmem [shape: f32[8,512], index: 7, kind: output, shape index: {}]  }
   0x1 LB: > { %s727_s25 = sadd.s32 4294967295, %s866_s24   ;;  %p731_p0 = scmp.ge.s32.totalorder %s866_s24, 1  ;;  %s866_s24 = sphi %s909_s24, %s17_s24  }
   0x2   : > { %p238_p1 = scmp.lt.s32.totalorder %s866_s24, 3 }
   0x4   : > { %p239_p2 = pnand %p731_p0, %p238_p1 }
   0x5   : > { %s732_s26 = sshll.u32 (!%p239_p2), %s727_s25, 5  ;;  %s734_s15 = sshll.u32 (!%p239_p2), %s727_s25, 1 }
   0x6   : > { %242 = sbr.rel (%p239_p2) target bundleno = 552 (0x228), region = 48  ;;  %p271_p3 = scmp.lt.s32.totalorder (!%p239_p2), %s732_s26, 63 }
   0x7   : > { %p277_p4 = scmp.lt.s32.totalorder (!%p239_p2), %s734_s15, 3 }
   0xb   : > { %s1025_s26 = smov (!%p271_p3, %s732_s26), 63  ;;  %vm433_vm0 = vcmask 130048   ;;  %v321_v20 = vld [vmem:[%s1018_s2 + $0x10] sm:$0xff]  ;;  %v319_v21 = vld [vmem:[%s1018_s2] sm:$0xff]  ;;  %v868_v24 = vmov 0   ;;  %v322_v31 = vld [vmem:[%s1018_s2 + $0x18] sm:$0xff] }
   0xc   : > { %s733_s27 = sshll.u32 %s1025_s26, 2  ;;  %858 = vset.pattern.permute.xlu1 %v868_v24  ;;  %857 = vset.pattern.permute.xlu0 %v868_v24  ;;  %v320_v32 = vld [vmem:[%s1018_s2 + $0x8] sm:$0xff]  ;;  %v542_v37 = vld [vmem:[%s1020_s4] sm:$0xff]  ;;  %v544_v50 = vld [vmem:[%s1020_s4 + $0x10] sm:$0xff]  ;;  %vm576_vm1 = vcmask 261120   ;;  %s1027_s15 = smov (!%p277_p4, %s734_s15), 3 }
   0xd   : > { %s922_s30 = scalar_lea.vmem %s1016_s0, %s733_s27  ;;  %335 = vperm.xlu0 %857, %v321_v20   ;;  %325 = vperm.xlu1 %858, %v319_v21   ;;  %v543_v38 = vld [vmem:[%s1020_s4 + $0x8] sm:$0xff]  ;;  %v844_v39 = vld [vmem:[%s1017_s1] sm:$0xff]  ;;  %s735_s16 = sshll.u32 %s1027_s15, 3 }
   0xe   : > { %v835_v0 = vld [vmem:[%s922_s30 + $0x38] sm:$0xff]  ;;  %v834_v4 = vld [vmem:[%s922_s30 + $0x30] sm:$0xff]  ;;  %v833_v8 = vld [vmem:[%s922_s30 + $0x28] sm:$0xff]  ;;  %859 = vset.pattern.permute.xlu2 %v868_v24  ;;  %s280_s19 = scalar_lea.vmem %s1023_s7, %s735_s16 }
   0xf   : > { %v843_v1 = vld [vmem:[%s922_s30 + $0x78] sm:$0xff]  ;;  %v462_v2 = vsel %vm433_vm0, %v835_v0, 0  ;;  %v842_v5 = vld [vmem:[%s922_s30 + $0x70] sm:$0xff]  ;;  %v459_v6 = vsel %vm433_vm0, %v834_v4, 0  ;;  %v841_v9 = vld [vmem:[%s922_s30 + $0x68] sm:$0xff]  ;;  %v456_v10 = vsel %vm433_vm0, %v833_v8, 0  ;;  %558 = vperm.xlu2 %859, %v544_v50  }
  0x10   : > { %v486_v3 = vsel %vm433_vm0, %v843_v1, 0  ;;  %488 = vmatpush.bf16.xpose.msra.mxu0 %v462_v2  ;;  %v483_v7 = vsel %vm433_vm0, %v842_v5, 0  ;;  %v480_v11 = vsel %vm433_vm0, %v841_v9, 0  ;;  %v832_v12 = vld [vmem:[%s922_s30 + $0x20] sm:$0xff]  ;;  %v831_v16 = vld [vmem:[%s922_s30 + $0x18] sm:$0xff]  ;;  %v830_v22 = vld [vmem:[%s922_s30 + $0x10] sm:$0xff] }
  0x11   : > { %507 = vmatpush.bf16.xpose.msra.mxu1 %v486_v3  ;;  %v840_v13 = vld [vmem:[%s922_s30 + $0x60] sm:$0xff]  ;;  %v453_v14 = vsel %vm433_vm0, %v832_v12, 0  ;;  %v839_v17 = vld [vmem:[%s922_s30 + $0x58] sm:$0xff]  ;;  %v450_v18 = vsel %vm433_vm0, %v831_v16, 0  ;;  %v838_v23 = vld [vmem:[%s922_s30 + $0x50] sm:$0xff]  ;;  %v447_v25 = vsel %vm433_vm0, %v830_v22, 0 }
  0x12   : > { %v477_v15 = vsel %vm433_vm0, %v840_v13, 0  ;;  %v474_v19 = vsel %vm433_vm0, %v839_v17, 0  ;;  %v471_v26 = vsel %vm433_vm0, %v838_v23, 0  ;;  %v829_v27 = vld [vmem:[%s922_s30 + $0x8] sm:$0xff]  ;;  %v828_v33 = vld [vmem:[%s922_s30] sm:$0xff] }
  0x13   : > { %v837_v28 = vld [vmem:[%s922_s30 + $0x48] sm:$0xff]  ;;  %v444_v29 = vsel %vm433_vm0, %v829_v27, 0  ;;  %v836_v34 = vld [vmem:[%s922_s30 + $0x40] sm:$0xff]  ;;  %v441_v35 = vsel %vm433_vm0, %v828_v33, 0 }
  0x14   : > { %v468_v30 = vsel %vm433_vm0, %v837_v28, 0  ;;  %v465_v36 = vsel %vm433_vm0, %v836_v34, 0  ;;  %v845_v40 = vld [vmem:[%s1017_s1 + $0x8] sm:$0xff]  ;;  %v634_v12 = vld [vmem:[%s1022_s6] sm:$0xff] }
  0x15   : > { %340 = vperm.xlu0 %857, %v322_v31   ;;  %330 = vperm.xlu1 %858, %v320_v32   ;;  %v847_v13 = vld [vmem:[%s1019_s3 + $0x8] sm:$0xff] }
  0x18   : > { %489 = vmatpush.bf16.xpose.msra.mxu0 %v459_v6  ;;  %v545_v6 = vld [vmem:[%s1020_s4 + $0x18] sm:$0xff] }
  0x19   : > { %508 = vmatpush.bf16.xpose.msra.mxu1 %v483_v7  ;;  %563 = vperm.xlu2 %859, %v545_v6  }
  0x1d   : > { %548 = vperm.xlu0 %857, %v542_v37   ;;  %553 = vperm.xlu1 %858, %v543_v38  }
  0x20   : > { %490 = vmatpush.bf16.xpose.msra.mxu0 %v456_v10 }
  0x21   : > { %509 = vmatpush.bf16.xpose.msra.mxu1 %v480_v11  ;;  %v846_v11 = vld [vmem:[%s1019_s3] sm:$0xff]  ;;  %637 = vperm.xlu2 %859, %v634_v12  }
  0x28   : > { %491 = vmatpush.bf16.xpose.msra.mxu0 %v453_v14 }
  0x29   : > { %510 = vmatpush.bf16.xpose.msra.mxu1 %v477_v15 }
  0x30   : > { %492 = vmatpush.bf16.xpose.msra.mxu0 %v450_v18 }
  0x31   : > { %511 = vmatpush.bf16.xpose.msra.mxu1 %v474_v19 }
  0x38   : > { %493 = vmatpush.bf16.xpose.msra.mxu0 %v447_v25 }
  0x39   : > { %512 = vmatpush.bf16.xpose.msra.mxu1 %v471_v26 }
  0x40   : > { %494 = vmatpush.bf16.xpose.msra.mxu0 %v444_v29 }
  0x41   : > { %513 = vmatpush.bf16.xpose.msra.mxu1 %v468_v30 }
  0x48   : > { %495 = vmatpush.bf16.xpose.msra.mxu0 %v441_v35 }
  0x49   : > { %514 = vmatpush.bf16.xpose.msra.mxu1 %v465_v36 }
  0x4f   : > { %808 = vmatmul.msk.bf16.vlgmr.msra.gmra.mxu0 %vm433_vm0, %v844_v39 }
  0x50   : > { %810 = vmatmul.msk.bf16.vlgmr.msra.gmra.mxu1 %vm433_vm0, %v844_v39 }
  0x5f   : > { %809 = vmatmul.msk.bf16.gmra.mxu0 %vm433_vm0, %v845_v40 }
  0x60   : > { %811 = vmatmul.msk.bf16.gmra.mxu1 %vm433_vm0, %v845_v40 }
  0x69   : > { %v559_v18 = vpop.permute.xlu2 %558 }
  0x73   : > { %v564_v22 = vpop.permute.xlu2 %563 }
  0x7f   : > { %v326_v45 = vpop.permute.xlu1 %325  ;;  %v336_v46 = vpop.permute.xlu0 %335 }
  0x87   : > { %v331_v49 = vpop.permute.xlu1 %330  ;;  %v341_v51 = vpop.permute.xlu0 %340 }
  0x8f   : > { %v554_v21 = vpop.permute.xlu1 %553  ;;  %v549_v27 = vpop.permute.xlu0 %548 }
  0xcc   : > { %v497_v41 = vpop.f32.mrf.mxu0 }
  0xcd   : > { %v516_v42 = vpop.f32.mrf.mxu1  ;;  %v498_v60 = vadd.f32 %v497_v41, %v326_v45 }
  0xce   : > { %v517_v61 = vadd.f32 %v516_v42, %v326_v45 }
  0xcf   : > { %v526_v7 = vmax.f32 %v498_v60, 0.0 }
  0xd0   : > { %v527_v8 = vmax.f32 %v517_v61, 0.0 }
  0xd4   : > { %v499_v43 = vpop.f32.mrf.mxu0 }
  0xd5   : > { %v518_v44 = vpop.f32.mrf.mxu1  ;;  %v500_v56 = vadd.f32 %v499_v43, %v331_v49 }
  0xd6   : > { %v519_v57 = vadd.f32 %v518_v44, %v331_v49 }
  0xd7   : > { %v528_v2 = vmax.f32 %v500_v56, 0.0 }
  0xd8   : > { %v529_v3 = vmax.f32 %v519_v57, 0.0 }
  0xd9   : > { %v534_v9 = vpack.c.bf16 %v528_v2, %v526_v7 }
  0xda   : > { %v535_v10 = vpack.c.bf16 %v529_v3, %v527_v8 }
  0xdc   : > { %v502_v47 = vpop.f32.mrf.mxu0 }
  0xdd   : > { %v521_v48 = vpop.f32.mrf.mxu1  ;;  %v503_v52 = vadd.f32 %v502_v47, %v336_v46  ;;  %v638_v47 = vpop.permute.xlu2 %637 }
  0xde   : > { %v522_v53 = vadd.f32 %v521_v48, %v336_v46  ;;  %v633_v46 = vld [vmem:[%s1021_s5] sm:$0xf] }
  0xdf   : > { %v530_v62 = vmax.f32 %v503_v52, 0.0 }
  0xe0   : > { %v531_v63 = vmax.f32 %v522_v53, 0.0 }
  0xe4   : > { %v504_v54 = vpop.f32.mrf.mxu0 }
  0xe5   : > { %v523_v55 = vpop.f32.mrf.mxu1  ;;  %v505_v58 = vadd.f32 %v504_v54, %v341_v51 }
  0xe6   : > { %v524_v59 = vadd.f32 %v523_v55, %v341_v51 }
  0xe7   : > { %v532_v0 = vmax.f32 %v505_v58, 0.0 }
  0xe8   : > { %v533_v1 = vmax.f32 %v524_v59, 0.0 }
  0xe9   : > { %v536_v4 = vpack.c.bf16 %v532_v0, %v530_v62 }
  0xea   : > { %v537_v5 = vpack.c.bf16 %v533_v1, %v531_v63 }
  0xeb   : > { %589 = vmatpush.bf16.msra.mxu2 %v536_v4 }
  0xec   : > { %608 = vmatpush.bf16.msra.mxu3 %v537_v5 }
  0xef   : > { %590 = vmatpush.bf16.msra.mxu2 %v534_v9 }
  0xf0   : > { %609 = vmatpush.bf16.msra.mxu3 %v535_v10 }
  0xf2   : > { %820 = vmatmul.msk.bf16.vlgmr.msra.gmra.mxu2 %vm576_vm1, %v846_v11 }
  0xf3   : > { %822 = vmatmul.msk.bf16.vlgmr.msra.gmra.mxu3 %vm576_vm1, %v846_v11 }
 0x102   : > { %821 = vmatmul.msk.bf16.gmra.mxu2 %vm576_vm1, %v847_v13 }
 0x103   : > { %823 = vmatmul.msk.bf16.gmra.mxu3 %vm576_vm1, %v847_v13 }
 0x175   : > { %v592_v14 = vpop.f32.mrf.mxu2 }
 0x176   : > { %v611_v15 = vpop.f32.mrf.mxu3  ;;  %v593_v32 = vadd.f32 %v592_v14, %v549_v27 }
 0x177   : > { %v612_v33 = vadd.f32 %v611_v15, %v549_v27 }
 0x178   : > { %v621_v42 = vmax.f32 %v593_v32, 0.0 }
 0x179   : > { %v622_v43 = vmax.f32 %v612_v33, 0.0 }
 0x17d   : > { %v594_v16 = vpop.f32.mrf.mxu2 }
 0x17e   : > { %v613_v17 = vpop.f32.mrf.mxu3  ;;  %v595_v28 = vadd.f32 %v594_v16, %v554_v21 }
 0x17f   : > { %v614_v29 = vadd.f32 %v613_v17, %v554_v21 }
 0x180   : > { %v623_v38 = vmax.f32 %v595_v28, 0.0 }
 0x181   : > { %v624_v39 = vmax.f32 %v614_v29, 0.0 }
 0x182   : > { %v629_v44 = vpack.c.bf16 %v623_v38, %v621_v42 }
 0x183   : > { %v630_v45 = vpack.c.bf16 %v624_v39, %v622_v43 }
 0x185   : > { %v597_v19 = vpop.f32.mrf.mxu2 }
 0x186   : > { %v616_v20 = vpop.f32.mrf.mxu3  ;;  %v598_v23 = vadd.f32 %v597_v19, %v559_v18 }
 0x187   : > { %v617_v24 = vadd.f32 %v616_v20, %v559_v18 }
 0x188   : > { %v625_v34 = vmax.f32 %v598_v23, 0.0 }
 0x189   : > { %v626_v35 = vmax.f32 %v617_v24, 0.0 }
 0x18d   : > { %v599_v25 = vpop.f32.mrf.mxu2 }
 0x18e   : > { %v618_v26 = vpop.f32.mrf.mxu3  ;;  %v600_v30 = vadd.f32 %v599_v25, %v564_v22 }
 0x18f   : > { %v619_v31 = vadd.f32 %v618_v26, %v564_v22 }
 0x190   : > { %v627_v36 = vmax.f32 %v600_v30, 0.0 }
 0x191   : > { %v628_v37 = vmax.f32 %v619_v31, 0.0 }
 0x192   : > { %v631_v40 = vpack.c.bf16 %v627_v36, %v625_v34 }
 0x193   : > { %v632_v41 = vpack.c.bf16 %v628_v37, %v626_v35 }
 0x194   : > { %649 = vmatpush.bf16.msrb.mxu2 %v631_v40 }
 0x195   : > { %662 = vmatpush.bf16.msrb.mxu3 %v632_v41 }
 0x198   : > { %650 = vmatpush.bf16.msrb.mxu2 %v629_v44 }
 0x199   : > { %663 = vmatpush.bf16.msrb.mxu3 %v630_v45 }
 0x19b   : > { %824 = vmatmul.msk.bf16.vlgmr.msrb.gmra.mxu2 %vm576_vm1, %v633_v46 }
 0x19c   : > { %825 = vmatmul.msk.bf16.vlgmr.msrb.gmra.mxu3 %vm576_vm1, %v633_v46 }
 0x21e   : > { %v652_v48 = vpop.f32.mrf.mxu2 }
 0x21f   : > { %v665_v49 = vpop.f32.mrf.mxu3  ;;  %v653_v50 = vadd.f32 %v652_v48, %v638_v47 }
 0x220   : > { %v666_v51 = vadd.f32 %v665_v49, %v638_v47 }
 0x221   : > { %669 = vst [vmem:[%s280_s19] sm:$0xff] %v653_v50 }
 0x222   : > { %670 = vst [vmem:[%s280_s19 + $0x8] sm:$0xff] %v666_v51 }
 0x226   : > { %v654_v52 = vpop.f32.mrf.mxu2 }
 0x227   : > { %v667_v53 = vpop.f32.mrf.mxu3 }
 0x228 PF: > { %s17_s24 = sadd.s32 1, %s866_s24  }
 0x229   : > { %p14_p5 = scmp.ge.s32.totalorder %s17_s24, 4  }
 0x22b   :  { %16 = sbr.rel (!%p14_p5) target bundleno = 1 (0x1), region = 78 }

</bundles_post_ra>
